<compile_context>
chip_gen: v6e
topology: v6e:2x2x1
jax: 0.10.0
libtpu: 0.0.40
codegen_flags: <defaults>
</compile_context>

<pallas_src>
import math
import functools

import jax
import jax.numpy as jnp
from jax.experimental import pallas as pl
from jax.experimental.pallas import tpu as pltpu


def _mha_fused_kernel(key_ref, value_ref, query_ref,
                      wkT_ref, bk_ref, wvT_ref, bv_ref, woT_ref, bo_ref,
                      out_ref, attn_ref, k_sc, v_sc,
                      *, num_head, head_dim, scale):
    """Grid = (batch, q_tile).

    Blocks: key/value (1, Lk, D) (resident per batch row), query/out (1, TQ, D),
            attn (1, H, TQ, Lk), weights (D, D) bf16, biases (1, D) f32.
    Scratch: k_sc / v_sc (H, Lk, Dh) bf16 — K/V projections carried across q tiles.
    """
    H, Dh = num_head, head_dim

    def split_heads(x):                       # (L, H*Dh) f32 -> (H, L, Dh) f32
        L = x.shape[0]
        return jnp.transpose(x.reshape(L, H, Dh), (1, 0, 2))

    # ---- K/V projections: once per batch row, carried across q tiles -------------------
    @pl.when(pl.program_id(1) == 0)
    def _():
        k = jnp.dot(key_ref[0].astype(jnp.bfloat16), wkT_ref[...],
                    preferred_element_type=jnp.float32) + bk_ref[...]        # (Lk, D) f32
        v = jnp.dot(value_ref[0].astype(jnp.bfloat16), wvT_ref[...],
                    preferred_element_type=jnp.float32) + bv_ref[...]        # (Lk, D) f32
        k_sc[...] = split_heads(k).astype(jnp.bfloat16)                      # (H, Lk, Dh)
        v_sc[...] = split_heads(v).astype(jnp.bfloat16)

    # ---- Q projection for this q tile (reference quirk: uses linear_value wv/bv) -------
    q = jnp.dot(query_ref[0].astype(jnp.bfloat16), wvT_ref[...],
                preferred_element_type=jnp.float32) + bv_ref[...]            # (TQ, D) f32
    q3 = split_heads(q * scale).astype(jnp.bfloat16)                         # (H, TQ, Dh)

    # ---- head-batched attention (single MXU dot per phase; softmax in f32) -------------
    s = jnp.einsum('hqd,hkd->hqk', q3, k_sc[...],
                   preferred_element_type=jnp.float32)                       # (H, TQ, Lk)
    s = s - jnp.max(s, axis=-1, keepdims=True)
    e = jnp.exp(s)
    a = e / jnp.sum(e, axis=-1, keepdims=True)    # exact divide: stored rows sum to 1
    attn_ref[0] = a
    # TODO(synk): dropout on `a` is identity in eval mode; no RNG applied here.

    ctx_h = jnp.einsum('hqk,hkd->hqd', a.astype(jnp.bfloat16), v_sc[...],
                       preferred_element_type=jnp.float32)                   # (H, TQ, Dh)
    tq = ctx_h.shape[1]
    ctx = jnp.transpose(ctx_h, (1, 0, 2)).reshape(tq, H * Dh)                # (TQ, D) lane-dense

    # ---- fused output projection --------------------------------------------------------
    out_ref[0] = jnp.dot(ctx.astype(jnp.bfloat16), woT_ref[...],
                         preferred_element_type=jnp.float32) + bo_ref[...]


def multi_headed_attention(params, key, value, query, num_head, *, q_tile=128):
    """key/value: (B, Lk, D), query: (B, Lq, D) -> (output (B, Lq, D), attn (B, H, Lq, Lk))."""
    B, Lk, D = key.shape
    Lq = query.shape[1]
    assert D % num_head == 0
    Dh = D // num_head

    TQ = Lq if Lq <= q_tile else q_tile
    assert Lq % TQ == 0, "TODO(synk): pad Lq to a multiple of the q tile"
    nqt = Lq // TQ

    # One-time wrapper-side relayout: PyTorch (Dout, Din) -> (Din, Dout) and bf16, so every
    # in-kernel projection is a plain NN dot (no in-kernel transpose) and weight DMA/VMEM halve.
    wkT = params["wk"].T.astype(jnp.bfloat16)
    wvT = params["wv"].T.astype(jnp.bfloat16)
    woT = params["wo"].T.astype(jnp.bfloat16)
    bk = params["bk"].reshape(1, D).astype(jnp.float32)
    bv = params["bv"].reshape(1, D).astype(jnp.float32)
    bo = params["bo"].reshape(1, D).astype(jnp.float32)

    # VMEM budget: blocks double-buffered unless single-buffered weights; plus scratch + temps.
    f32, bf16 = 4, 2
    footprint = (
        2 * 2 * Lk * D * f32                       # key, value blocks (double-buffered)
        + 2 * TQ * D * f32                         # query block
        + 3 * D * D * bf16 + 3 * D * f32           # weights + biases (single-buffered)
        + 2 * TQ * D * f32                         # output block
        + 2 * num_head * TQ * Lk * f32             # attention-weights block
        + 2 * num_head * Lk * max(Dh, 128) * bf16  # k/v head-split scratch (lane-padded)
        + 4 * num_head * TQ * Lk * f32             # in-kernel score/softmax temporaries (est.)
    )
    if footprint > 96 * 1024 * 1024:
        raise ValueError(
            f"MHA block footprint ~{footprint >> 20} MiB exceeds the VMEM budget; "
            "reduce q_tile or stream K/V (see TODO in header).")
    vmem_limit = min(100 * 1024 * 1024, max(32 * 1024 * 1024, int(1.25 * footprint)))

    kern = functools.partial(_mha_fused_kernel, num_head=num_head, head_dim=Dh,
                             scale=1.0 / math.sqrt(Dh))

    def w_spec(shape):  # resident weights/biases: constant index_map, single buffer
        return pl.BlockSpec(shape, lambda b, qt: (0, 0), pipeline_mode=pl.Buffered(1))

    out, attn = pl.pallas_call(
        kern,
        out_shape=(
            jax.ShapeDtypeStruct((B, Lq, D), jnp.float32),
            jax.ShapeDtypeStruct((B, num_head, Lq, Lk), jnp.float32),
        ),
        grid=(B, nqt),
        in_specs=[
            pl.BlockSpec((1, Lk, D), lambda b, qt: (b, 0, 0)),     # key   (resident per row)
            pl.BlockSpec((1, Lk, D), lambda b, qt: (b, 0, 0)),     # value (resident per row)
            pl.BlockSpec((1, TQ, D), lambda b, qt: (b, qt, 0)),    # query (Lq-tiled)
            w_spec((D, D)), w_spec((1, D)),                        # wkT, bk
            w_spec((D, D)), w_spec((1, D)),                        # wvT, bv
            w_spec((D, D)), w_spec((1, D)),                        # woT, bo
        ],
        out_specs=(
            pl.BlockSpec((1, TQ, D), lambda b, qt: (b, qt, 0)),              # output
            pl.BlockSpec((1, num_head, TQ, Lk), lambda b, qt: (b, 0, qt, 0)),  # attn weights
        ),
        scratch_shapes=[
            pltpu.VMEM((num_head, Lk, Dh), jnp.bfloat16),   # K projection (head-split, carried)
            pltpu.VMEM((num_head, Lk, Dh), jnp.bfloat16),   # V projection (head-split, carried)
        ],
        compiler_params=pltpu.CompilerParams(
            dimension_semantics=("parallel", "arbitrary"),
            vmem_limit_bytes=vmem_limit,
        ),
    )(key, value, query, wkT, bk, wvT, bv, woT, bo)
    return out, attn


# ---------------------------------------------------------------------------
# Pure-JAX f32 reference (for the correctness check)
# ---------------------------------------------------------------------------
def reference(params, key, value, query, num_head):
    B, Lk, D = key.shape
    Lq = query.shape[1]
    Dh = D // num_head
    lin = lambda x, w, b: x @ w.T + b
    k = lin(key, params["wk"], params["bk"]).reshape(B, Lk, num_head, Dh).transpose(0, 2, 1, 3)
    v = lin(value, params["wv"], params["bv"]).reshape(B, Lk, num_head, Dh).transpose(0, 2, 1, 3)
    q = lin(query, params["wv"], params["bv"]).reshape(B, Lq, num_head, Dh).transpose(0, 2, 1, 3)
    q = q / math.sqrt(Dh)
    s = jnp.einsum("bhqd,bhkd->bhqk", q, k)
    a = jax.nn.softmax(s, axis=-1)
    ctx = jnp.einsum("bhqk,bhkd->bhqd", a, v).transpose(0, 2, 1, 3).reshape(B, Lq, D)
    out = lin(ctx, params["wo"], params["bo"])
    return out, a


if __name__ == "__main__":
    B, L, D, H = 2, 8, 32, 4  # batch, seq, model_dim, num_head (head_dim = 8)

    root = jax.random.PRNGKey(0)
    keys = jax.random.split(root, 12)
    bound = 1.0 / math.sqrt(D)
    uni = lambda kk, shp: jax.random.uniform(kk, shp, jnp.float32, -bound, bound)

    params = {
        "wk": uni(keys[0], (D, D)), "bk": uni(keys[1], (D,)),
        "wv": uni(keys[2], (D, D)), "bv": uni(keys[3], (D,)),
        "wq": uni(keys[4], (D, D)), "bq": uni(keys[5], (D,)),  # dead on this path (ref quirk)
        "wo": uni(keys[6], (D, D)), "bo": uni(keys[7], (D,)),
    }

    key_in = jax.random.normal(keys[8], (B, L, D), jnp.float32)
    value_in = jax.random.normal(keys[9], (B, L, D), jnp.float32)
    query_in = jax.random.normal(keys[10], (B, L, D), jnp.float32)

    out, top_attn = multi_headed_attention(params, key_in, value_in, query_in, H)
    out = jax.block_until_ready(out)
    top_attn = jax.block_until_ready(top_attn)

    ref_out, ref_attn = reference(params, key_in, value_in, query_in, H)
    assert out.shape == (B, L, D) and top_attn.shape == (B, H, L, L)
    # Tolerance accommodates bf16 matmul operands (f32 accumulation) vs the f32 reference.
    assert jnp.allclose(out, ref_out, atol=2e-2, rtol=2e-2), \
        float(jnp.max(jnp.abs(out - ref_out)))
    assert jnp.allclose(top_attn, ref_attn, atol=2e-2, rtol=2e-2), \
        float(jnp.max(jnp.abs(top_attn - ref_attn)))

    print("KERNEL_OK")
</pallas_src>

<mosaic_0001>
module attributes {stable_mosaic.version = 11 : i64} {
  func.func @_mha_fused_kernel(%arg0: i32, %arg1: i32, %arg2: memref<1x8x32xf32, #tpu.memory_space<vmem>>, %arg3: memref<1x8x32xf32, #tpu.memory_space<vmem>>, %arg4: memref<1x8x32xf32, #tpu.memory_space<vmem>>, %arg5: memref<32x32xbf16, #tpu.memory_space<vmem>>, %arg6: memref<1x32xf32, #tpu.memory_space<vmem>>, %arg7: memref<32x32xbf16, #tpu.memory_space<vmem>>, %arg8: memref<1x32xf32, #tpu.memory_space<vmem>>, %arg9: memref<32x32xbf16, #tpu.memory_space<vmem>>, %arg10: memref<1x32xf32, #tpu.memory_space<vmem>>, %arg11: memref<1x8x32xf32, #tpu.memory_space<vmem>>, %arg12: memref<1x4x8x8xf32, #tpu.memory_space<vmem>>, %arg13: memref<4x8x8xbf16, #tpu.memory_space<vmem>>, %arg14: memref<4x8x8xbf16, #tpu.memory_space<vmem>>) attributes {dimension_semantics = [#tpu.dimension_semantics<parallel>, #tpu.dimension_semantics<arbitrary>], iteration_bounds = array<i64: 2, 1>, scalar_prefetch = 0 : i64, scratch_operands = 2 : i64, tpu.core_type = #tpu.core_type<tc>, window_params = [{transform_indices = @transform_0, window_bounds = array<i64: 1, 8, 32>}, {transform_indices = @transform_1, window_bounds = array<i64: 1, 8, 32>}, {transform_indices = @transform_2, window_bounds = array<i64: 1, 8, 32>}, {pipeline_mode = #tpu.pipeline_mode<synchronous>, transform_indices = @transform_3, window_bounds = array<i64: 32, 32>}, {pipeline_mode = #tpu.pipeline_mode<synchronous>, transform_indices = @transform_4, window_bounds = array<i64: 1, 32>}, {pipeline_mode = #tpu.pipeline_mode<synchronous>, transform_indices = @transform_5, window_bounds = array<i64: 32, 32>}, {pipeline_mode = #tpu.pipeline_mode<synchronous>, transform_indices = @transform_6, window_bounds = array<i64: 1, 32>}, {pipeline_mode = #tpu.pipeline_mode<synchronous>, transform_indices = @transform_7, window_bounds = array<i64: 32, 32>}, {pipeline_mode = #tpu.pipeline_mode<synchronous>, transform_indices = @transform_8, window_bounds = array<i64: 1, 32>}, {transform_indices = @transform_9, window_bounds = array<i64: 1, 8, 32>}, {transform_indices = @transform_10, window_bounds = array<i64: 1, 4, 8, 8>}]} {
    %c0_i32 = arith.constant 0 : i32
    %0 = arith.cmpi eq, %arg1, %c0_i32 : i32
    %1 = arith.extui %0 : i1 to i32
    %c0_i32_0 = arith.constant 0 : i32
    %2 = arith.cmpi ne, %1, %c0_i32_0 : i32
    scf.if %2 {
      %c0_30 = arith.constant 0 : index
      %c0_31 = arith.constant 0 : index
      %c0_32 = arith.constant 0 : index
      %44 = vector.load %arg2[%c0_30, %c0_31, %c0_32] : memref<1x8x32xf32, #tpu.memory_space<vmem>>, vector<1x8x32xf32>
      %45 = vector.shape_cast %44 : vector<1x8x32xf32> to vector<8x32xf32>
      %46 = arith.truncf %45 : vector<8x32xf32> to vector<8x32xbf16>
      %c0_33 = arith.constant 0 : index
      %c0_34 = arith.constant 0 : index
      %47 = vector.load %arg5[%c0_33, %c0_34] : memref<32x32xbf16, #tpu.memory_space<vmem>>, vector<32x32xbf16>
      %cst_35 = arith.constant dense<0.000000e+00> : vector<8x32xf32>
      %48 = tpu.matmul %46, %47, %cst_35 {dimension_numbers = #tpu.dot_dimension_numbers<[1], [0], [0], [1], [0, 0, 1, 1], [], []>} : vector<8x32xbf16>, vector<32x32xbf16>, vector<8x32xf32> -> vector<8x32xf32>
      %c0_36 = arith.constant 0 : index
      %c0_37 = arith.constant 0 : index
      %49 = vector.load %arg6[%c0_36, %c0_37] : memref<1x32xf32, #tpu.memory_space<vmem>>, vector<1x32xf32>
      %50 = vector.broadcast %49 : vector<1x32xf32> to vector<8x32xf32>
      %51 = arith.addf %48, %50 : vector<8x32xf32>
      %c0_38 = arith.constant 0 : index
      %c0_39 = arith.constant 0 : index
      %c0_40 = arith.constant 0 : index
      %52 = vector.load %arg3[%c0_38, %c0_39, %c0_40] : memref<1x8x32xf32, #tpu.memory_space<vmem>>, vector<1x8x32xf32>
      %53 = vector.shape_cast %52 : vector<1x8x32xf32> to vector<8x32xf32>
      %54 = arith.truncf %53 : vector<8x32xf32> to vector<8x32xbf16>
      %c0_41 = arith.constant 0 : index
      %c0_42 = arith.constant 0 : index
      %55 = vector.load %arg7[%c0_41, %c0_42] : memref<32x32xbf16, #tpu.memory_space<vmem>>, vector<32x32xbf16>
      %cst_43 = arith.constant dense<0.000000e+00> : vector<8x32xf32>
      %56 = tpu.matmul %54, %55, %cst_43 {dimension_numbers = #tpu.dot_dimension_numbers<[1], [0], [0], [1], [0, 0, 1, 1], [], []>} : vector<8x32xbf16>, vector<32x32xbf16>, vector<8x32xf32> -> vector<8x32xf32>
      %c0_44 = arith.constant 0 : index
      %c0_45 = arith.constant 0 : index
      %57 = vector.load %arg8[%c0_44, %c0_45] : memref<1x32xf32, #tpu.memory_space<vmem>>, vector<1x32xf32>
      %58 = vector.broadcast %57 : vector<1x32xf32> to vector<8x32xf32>
      %59 = arith.addf %56, %58 : vector<8x32xf32>
      %60 = vector.shape_cast %51 : vector<8x32xf32> to vector<8x4x8xf32>
      %61 = tpu.transpose %60, [1, 0, 2] : vector<8x4x8xf32> -> vector<4x8x8xf32>
      %62 = arith.truncf %61 : vector<4x8x8xf32> to vector<4x8x8xbf16>
      %c0_46 = arith.constant 0 : index
      %c0_47 = arith.constant 0 : index
      %c0_48 = arith.constant 0 : index
      %63 = vector.load %arg13[%c0_46, %c0_47, %c0_48] : memref<4x8x8xbf16, #tpu.memory_space<vmem>>, vector<4x8x8xbf16>
      tpu.vector_store %arg13[%c0_46, %c0_47, %c0_48], %62 {strides = array<i32>} : memref<4x8x8xbf16, #tpu.memory_space<vmem>>, vector<4x8x8xbf16>,
      %64 = vector.shape_cast %59 : vector<8x32xf32> to vector<8x4x8xf32>
      %65 = tpu.transpose %64, [1, 0, 2] : vector<8x4x8xf32> -> vector<4x8x8xf32>
      %66 = arith.truncf %65 : vector<4x8x8xf32> to vector<4x8x8xbf16>
      %c0_49 = arith.constant 0 : index
      %c0_50 = arith.constant 0 : index
      %c0_51 = arith.constant 0 : index
      %67 = vector.load %arg14[%c0_49, %c0_50, %c0_51] : memref<4x8x8xbf16, #tpu.memory_space<vmem>>, vector<4x8x8xbf16>
      tpu.vector_store %arg14[%c0_49, %c0_50, %c0_51], %66 {strides = array<i32>} : memref<4x8x8xbf16, #tpu.memory_space<vmem>>, vector<4x8x8xbf16>,
    } else {
    }
    %c0 = arith.constant 0 : index
    %c0_1 = arith.constant 0 : index
    %c0_2 = arith.constant 0 : index
    %3 = vector.load %arg4[%c0, %c0_1, %c0_2] : memref<1x8x32xf32, #tpu.memory_space<vmem>>, vector<1x8x32xf32>
    %4 = vector.shape_cast %3 : vector<1x8x32xf32> to vector<8x32xf32>
    %5 = arith.truncf %4 : vector<8x32xf32> to vector<8x32xbf16>
    %c0_3 = arith.constant 0 : index
    %c0_4 = arith.constant 0 : index
    %6 = vector.load %arg7[%c0_3, %c0_4] : memref<32x32xbf16, #tpu.memory_space<vmem>>, vector<32x32xbf16>
    %cst = arith.constant dense<0.000000e+00> : vector<8x32xf32>
    %7 = tpu.matmul %5, %6, %cst {dimension_numbers = #tpu.dot_dimension_numbers<[1], [0], [0], [1], [0, 0, 1, 1], [], []>} : vector<8x32xbf16>, vector<32x32xbf16>, vector<8x32xf32> -> vector<8x32xf32>
    %c0_5 = arith.constant 0 : index
    %c0_6 = arith.constant 0 : index
    %8 = vector.load %arg8[%c0_5, %c0_6] : memref<1x32xf32, #tpu.memory_space<vmem>>, vector<1x32xf32>
    %9 = vector.broadcast %8 : vector<1x32xf32> to vector<8x32xf32>
    %10 = arith.addf %7, %9 : vector<8x32xf32>
    %cst_7 = arith.constant 0.353553385 : f32
    %11 = vector.broadcast %cst_7 : f32 to vector<8x32xf32>
    %12 = arith.mulf %10, %11 : vector<8x32xf32>
    %13 = vector.shape_cast %12 : vector<8x32xf32> to vector<8x4x8xf32>
    %14 = tpu.transpose %13, [1, 0, 2] : vector<8x4x8xf32> -> vector<4x8x8xf32>
    %15 = arith.truncf %14 : vector<4x8x8xf32> to vector<4x8x8xbf16>
    %c0_8 = arith.constant 0 : index
    %c0_9 = arith.constant 0 : index
    %c0_10 = arith.constant 0 : index
    %16 = vector.load %arg13[%c0_8, %c0_9, %c0_10] : memref<4x8x8xbf16, #tpu.memory_space<vmem>>, vector<4x8x8xbf16>
    "tpu.trace_start"() <{level = 10 : i32, message = "hqd,hkd->hqk"}> : () -> ()
    %cst_11 = arith.constant dense<0.000000e+00> : vector<4x8x8xf32>
    %17 = tpu.matmul %15, %16, %cst_11 {dimension_numbers = #tpu.dot_dimension_numbers<[2], [2], [1], [1], [0, 0, 0, 1, 1, 1], [0], [0]>} : vector<4x8x8xbf16>, vector<4x8x8xbf16>, vector<4x8x8xf32> -> vector<4x8x8xf32>
    "tpu.trace_stop"() : () -> ()
    %cst_12 = arith.constant dense<0xFF800000> : vector<4x8xf32>
    %18 = vector.multi_reduction <maximumf>, %17, %cst_12 [2] : vector<4x8x8xf32> to vector<4x8xf32>
    %19 = vector.shape_cast %18 : vector<4x8xf32> to vector<4x8x1xf32>
    %20 = vector.broadcast %19 : vector<4x8x1xf32> to vector<4x8x8xf32>
    %21 = arith.subf %17, %20 : vector<4x8x8xf32>
    %22 = math.exp %21 : vector<4x8x8xf32>
    %cst_13 = arith.constant dense<0.000000e+00> : vector<4x8xf32>
    %23 = vector.multi_reduction <add>, %22, %cst_13 [2] : vector<4x8x8xf32> to vector<4x8xf32>
    %24 = vector.shape_cast %23 : vector<4x8xf32> to vector<4x8x1xf32>
    %25 = vector.broadcast %24 : vector<4x8x1xf32> to vector<4x8x8xf32>
    %26 = arith.divf %22, %25 : vector<4x8x8xf32>
    %c0_14 = arith.constant 0 : index
    %c0_15 = arith.constant 0 : index
    %c0_16 = arith.constant 0 : index
    %c0_17 = arith.constant 0 : index
    %27 = vector.load %arg12[%c0_14, %c0_15, %c0_16, %c0_17] : memref<1x4x8x8xf32, #tpu.memory_space<vmem>>, vector<1x4x8x8xf32>
    %28 = vector.shape_cast %27 : vector<1x4x8x8xf32> to vector<4x8x8xf32>
    %29 = vector.shape_cast %26 : vector<4x8x8xf32> to vector<1x4x8x8xf32>
    tpu.vector_store %arg12[%c0_14, %c0_15, %c0_16, %c0_17], %29 {strides = array<i32>} : memref<1x4x8x8xf32, #tpu.memory_space<vmem>>, vector<1x4x8x8xf32>,
    %30 = arith.truncf %26 : vector<4x8x8xf32> to vector<4x8x8xbf16>
    %c0_18 = arith.constant 0 : index
    %c0_19 = arith.constant 0 : index
    %c0_20 = arith.constant 0 : index
    %31 = vector.load %arg14[%c0_18, %c0_19, %c0_20] : memref<4x8x8xbf16, #tpu.memory_space<vmem>>, vector<4x8x8xbf16>
    "tpu.trace_start"() <{level = 10 : i32, message = "hqk,hkd->hqd"}> : () -> ()
    %cst_21 = arith.constant dense<0.000000e+00> : vector<4x8x8xf32>
    %32 = tpu.matmul %30, %31, %cst_21 {dimension_numbers = #tpu.dot_dimension_numbers<[2], [1], [1], [2], [0, 0, 0, 1, 1, 2], [0], [0]>} : vector<4x8x8xbf16>, vector<4x8x8xbf16>, vector<4x8x8xf32> -> vector<4x8x8xf32>
    "tpu.trace_stop"() : () -> ()
    %33 = tpu.transpose %32, [1, 0, 2] : vector<4x8x8xf32> -> vector<8x4x8xf32>
    %34 = vector.shape_cast %33 : vector<8x4x8xf32> to vector<8x32xf32>
    %35 = arith.truncf %34 : vector<8x32xf32> to vector<8x32xbf16>
    %c0_22 = arith.constant 0 : index
    %c0_23 = arith.constant 0 : index
    %36 = vector.load %arg9[%c0_22, %c0_23] : memref<32x32xbf16, #tpu.memory_space<vmem>>, vector<32x32xbf16>
    %cst_24 = arith.constant dense<0.000000e+00> : vector<8x32xf32>
    %37 = tpu.matmul %35, %36, %cst_24 {dimension_numbers = #tpu.dot_dimension_numbers<[1], [0], [0], [1], [0, 0, 1, 1], [], []>} : vector<8x32xbf16>, vector<32x32xbf16>, vector<8x32xf32> -> vector<8x32xf32>
    %c0_25 = arith.constant 0 : index
    %c0_26 = arith.constant 0 : index
    %38 = vector.load %arg10[%c0_25, %c0_26] : memref<1x32xf32, #tpu.memory_space<vmem>>, vector<1x32xf32>
    %39 = vector.broadcast %38 : vector<1x32xf32> to vector<8x32xf32>
    %40 = arith.addf %37, %39 : vector<8x32xf32>
    %c0_27 = arith.constant 0 : index
    %c0_28 = arith.constant 0 : index
    %c0_29 = arith.constant 0 : index
    %41 = vector.load %arg11[%c0_27, %c0_28, %c0_29] : memref<1x8x32xf32, #tpu.memory_space<vmem>>, vector<1x8x32xf32>
    %42 = vector.shape_cast %41 : vector<1x8x32xf32> to vector<8x32xf32>
    %43 = vector.shape_cast %40 : vector<8x32xf32> to vector<1x8x32xf32>
    tpu.vector_store %arg11[%c0_27, %c0_28, %c0_29], %43 {strides = array<i32>} : memref<1x8x32xf32, #tpu.memory_space<vmem>>, vector<1x8x32xf32>,
    return
  }
  func.func @transform_0(%arg0: i32, %arg1: i32) -> (i32, i32, i32) {
    %c0_i32 = arith.constant 0 : i32
    %c0_i32_0 = arith.constant 0 : i32
    %c0_i32_1 = arith.constant 0 : i32
    return %arg0, %c0_i32, %c0_i32_0 : i32, i32, i32
  }
  func.func @transform_1(%arg0: i32, %arg1: i32) -> (i32, i32, i32) {
    %c0_i32 = arith.constant 0 : i32
    %c0_i32_0 = arith.constant 0 : i32
    %c0_i32_1 = arith.constant 0 : i32
    return %arg0, %c0_i32, %c0_i32_0 : i32, i32, i32
  }
  func.func @transform_2(%arg0: i32, %arg1: i32) -> (i32, i32, i32) {
    %c0_i32 = arith.constant 0 : i32
    %c0_i32_0 = arith.constant 0 : i32
    return %arg0, %arg1, %c0_i32 : i32, i32, i32
  }
  func.func @transform_3(%arg0: i32, %arg1: i32) -> (i32, i32) {
    %c0_i32 = arith.constant 0 : i32
    %c0_i32_0 = arith.constant 0 : i32
    %c0_i32_1 = arith.constant 0 : i32
    return %c0_i32, %c0_i32_0 : i32, i32
  }
  func.func @transform_4(%arg0: i32, %arg1: i32) -> (i32, i32) {
    %c0_i32 = arith.constant 0 : i32
    %c0_i32_0 = arith.constant 0 : i32
    %c0_i32_1 = arith.constant 0 : i32
    return %c0_i32, %c0_i32_0 : i32, i32
  }
  func.func @transform_5(%arg0: i32, %arg1: i32) -> (i32, i32) {
    %c0_i32 = arith.constant 0 : i32
    %c0_i32_0 = arith.constant 0 : i32
    %c0_i32_1 = arith.constant 0 : i32
    return %c0_i32, %c0_i32_0 : i32, i32
  }
  func.func @transform_6(%arg0: i32, %arg1: i32) -> (i32, i32) {
    %c0_i32 = arith.constant 0 : i32
    %c0_i32_0 = arith.constant 0 : i32
    %c0_i32_1 = arith.constant 0 : i32
    return %c0_i32, %c0_i32_0 : i32, i32
  }
  func.func @transform_7(%arg0: i32, %arg1: i32) -> (i32, i32) {
    %c0_i32 = arith.constant 0 : i32
    %c0_i32_0 = arith.constant 0 : i32
    %c0_i32_1 = arith.constant 0 : i32
    return %c0_i32, %c0_i32_0 : i32, i32
  }
  func.func @transform_8(%arg0: i32, %arg1: i32) -> (i32, i32) {
    %c0_i32 = arith.constant 0 : i32
    %c0_i32_0 = arith.constant 0 : i32
    %c0_i32_1 = arith.constant 0 : i32
    return %c0_i32, %c0_i32_0 : i32, i32
  }
  func.func @transform_9(%arg0: i32, %arg1: i32) -> (i32, i32, i32) {
    %c0_i32 = arith.constant 0 : i32
    %c0_i32_0 = arith.constant 0 : i32
    return %arg0, %arg1, %c0_i32 : i32, i32, i32
  }
  func.func @transform_10(%arg0: i32, %arg1: i32) -> (i32, i32, i32, i32) {
    %c0_i32 = arith.constant 0 : i32
    %c0_i32_0 = arith.constant 0 : i32
    %c0_i32_1 = arith.constant 0 : i32
    return %arg0, %c0_i32, %arg1, %c0_i32_0 : i32, i32, i32, i32
  }
}

</mosaic_0001>

<bundles_post_ra>
// kernel: tpu_custom_call.1
= control target key start
LH: loop header
LB: loop body
LE: loop exit
PB: predicated region body
PF: predicated region fallthrough
CT: control target
= control target key end

     0   :  { %s3230_s0 = inlined_call_operand.hbm [shape: f32[2,8,32], index: 0, kind: input, shape index: {}]   ;;  %s3231_s1 = inlined_call_operand.hbm [shape: f32[2,8,32], index: 1, kind: input, shape index: {}]   ;;  %s3232_s2 = inlined_call_operand.hbm [shape: f32[2,8,32], index: 2, kind: input, shape index: {}]   ;;  %s3233_s3 = inlined_call_operand.hbm [shape: bf16[32,32], index: 3, kind: input, shape index: {}]   ;;  %s3234_s4 = inlined_call_operand.vmem [shape: f32[1,32], index: 4, kind: input, shape index: {}]   ;;  %s3235_s5 = inlined_call_operand.hbm [shape: bf16[32,32], index: 5, kind: input, shape index: {}]   ;;  %s3236_s6 = inlined_call_operand.vmem [shape: f32[1,32], index: 6, kind: input, shape index: {}]   ;;  %s3237_s7 = inlined_call_operand.hbm [shape: bf16[32,32], index: 7, kind: input, shape index: {}]   ;;  %s3238_s8 = inlined_call_operand.vmem [shape: f32[1,32], index: 8, kind: input, shape index: {}]   ;;  %s3239_s9 = inlined_call_operand.hbm [shape: f32[2,8,32], index: 9, kind: output, shape index: {0}]   ;;  %s3240_s10 = inlined_call_operand.hbm [shape: f32[2,4,8,8], index: 10, kind: output, shape index: {1}]  }
   0x1   :  { %3259 = sst [smem:[#allocation30_spill]] %s3231_s1 }
   0x2   :  { %3260 = sst [smem:[#allocation31_spill]] %s3233_s3 }
   0x3   :  { %3261 = sst [smem:[#allocation32_spill]] %s3235_s5 }
   0x4   :  { %3262 = sst [smem:[#allocation33_spill]] %s3238_s8 }
   0x5   :  { %3263 = sst [smem:[#allocation34_spill]] %s3239_s9 }
   0x6   :  { %16 = vsyncpa [#allocation5], 0 }
   0x7   :  { %18 = vsyncpa [#allocation5 + $0x1], 0 }
   0x8   :  { %19 = vsyncpa [#allocation8], 0 }
   0x9   :  { %21 = vsyncpa [#allocation8 + $0x1], 0 }
   0xa   :  { %22 = vsyncpa [#allocation11], 0 }
   0xb   :  { %23 = vsyncpa [#allocation14], 0 }
   0xc   :  { %24 = vsyncpa [#allocation6], 0 }
   0xd   :  { %26 = vsyncpa [#allocation6 + $0x1], 0 }
   0xe   :  { %27 = vsyncpa [#allocation17], 0 }
   0xf   :  { %29 = vsyncpa [#allocation17 + $0x1], 0  ;;  %s2742_s13 = smov 0   ;;  %s2744_s14 = smov 0  }
  0x10   :  { %s2746_s15 = smov 0   ;;  %s2748_s16 = smov 0  }
  0x11   :  { %s2750_s17 = smov 0   ;;  %s2752_s18 = smov 0  }
  0x12 LB: > { %3264 = sst [smem:[#allocation24_spill]] %s2644_s13  ;;  %s2773_s19 = sadd.s32 4294967295, %s2664_s18   ;;  %s2664_s18 = sphi %s2752_s18, %s35_s18   ;;  %s2660_s17 = sphi %s2750_s17, %s3303_s17   ;;  %s2656_s16 = sphi %s2748_s16, %s3302_s16   ;;  %s2652_s15 = sphi %s2746_s15, %s3306_s15   ;;  %s2648_s14 = sphi %s2744_s14, %s3305_s14   ;;  %s2644_s13 = sphi %s2742_s13, %s3304_s13  }
  0x13   : > { %3265 = sst [smem:[#allocation25_spill]] %s2660_s17  ;;  %s2066_s20 = sadd.s32 4294967294, %s2664_s18  }
  0x14   : > { %3266 = sst [smem:[#allocation26_spill]] %s2664_s18  ;;  %p67_p0 = scmp.ne.s32.totalorder %s2648_s14, %s2644_s13 }
  0x15   : > { %p3253_p1 = scmp.eq.s32.totalorder %s2773_s19, 0  ;;  %p279_p3 = scmp.eq.s32.totalorder %s2066_s20, 1 }
  0x16   : > { %p2067_p5 = scmp.ge.s32.totalorder %s2664_s18, 1  ;;  %p314_p7 = scmp.lt.s32.totalorder %s2664_s18, 3 }
  0x17   : > { %p2782_p4 = por %p3253_p1, %p67_p0  ;;  %p2787_p6 = por %p279_p3, %p67_p0 }
  0x18   : > { %p2792_p8 = pnand %p2067_p5, %p314_p7  ;;  %s2666_s24 = smov [#allocation10]  }
  0x19   : > { %s3267_s21 = scalar_select %p2782_p4, 1, 0 }
  0x1a   : > { %s3268_s22 = scalar_select %p2787_p6, 1, 0 }
  0x1b   : > { %s3270_s23 = scalar_select %p2792_p8, 1, 0 }
  0x1c   : > { %3269 = sst [smem:[#allocation27_spill]] %s3268_s22  ;;  %s326_s25 = sshll.u32 %s2666_s24, 4  ;;  %s327_s25 = int_to_ptr.vmem [resolvable:$true] %s326_s25 }
  0x1d   : > { %p2257_p9 = pneg %p2792_p8  ;;  %s47_s27 = sadd.s32 1, %s2660_s17 }
  0x1e   : > { %s2391_s28 = scalar_lea.vmem %s327_s25, 256  ;;  %p2399_p5 = scmp.lt.s32.totalorder %s327_s25, %s327_s25 }
  0x1f   : > { %p2801_p11 = pnand %p2257_p9, %p3253_p1  ;;  %p2392_p13 = scmp.ne.s32.totalorder %s327_s25, %s2391_s28 }
  0x20   : > { %p2400_p7 = scmp.lt.s32.totalorder %s2391_s28, %s2391_s28 }
  0x21   : > { %p3254_p12 = pneg %p2801_p11 }
  0x22   : > { %p2401_p2 = por %p2400_p7, %p2399_p5 }
  0x23   : > { %p2394_p0 = pnand %p2392_p13, %p3254_p12 }
  0x25   : > { %p2395_p3 = pneg %p2394_p0 }
  0x27   : > { %p2402_p10 = pnand %p2401_p2, %p2395_p3 }
  0x29   : > { %2405 = shalt.err (!%p2402_p10)
}
  0x2a   : > { %s3242_s29 = smov 64   ;;  %s3244_s30 = smov 4  }
  0x2b   : > { %s3272_s3 = sld [smem:[#allocation31_spill]]  ;;  %p49_p2 = scmp.ge.s32.totalorder %s47_s27, 2 }
  0x2c   : > { %s54_s20 = sadd.s32 1, %s2652_s15  ;;  %p61_p9 = scmp.ne.s32.totalorder %s2652_s15, %s2648_s14 }
  0x2d   : > { %p62_p10 = scmp.eq.s32.totalorder %s2664_s18, 0  ;;  %s3308_s27 = smov (%p49_p2, %s47_s27), 0 }
  0x2e   : > { %3273 = sst [smem:[#allocation28_spill]] %s3308_s27  ;;  %p3274_p0 = scmp.eq.s32.totalorder %s2773_s19, 1 }
  0x2f   : > { %p63_p13 = por %p62_p10, %p61_p9  ;;  %s51_s28 = ssub.s32 %s2660_s17, %s3308_s27 }
  0x30   : > { %p2827_p3 = por %p3274_p0, %p61_p9  ;;  %p2287_p5 = scmp.lt.s32.totalorder %s2664_s18, 2 }
  0x31   : > { %2260 = dma.hbm_to_vmem [thread:$0]  (!%p2801_p11), %s3272_s3, 256, %s327_s25, [#allocation11], %s3242_s29, %s3242_s29, %s3244_s30  }
  0x32   : > { %s3275_s24 = scalar_select %p2827_p3, 1, 0 }
  0x33   : > { %p52_p7 = scmp.eq.s32.totalorder %s51_s28, 0  ;;  %s3248_s22 = sand.u32 1, %s2652_s15  }
  0x34   : > { %s2837_s25 = sshll.u32 %s3248_s22, 3  ;;  %s2840_s11 = sshll.u32 %s2660_s17, 7 }
  0x35   : > { %s2843_s12 = scalar_select %p52_p7, %s2652_s15, %s54_s20  }
  0x36   : > { %p2845_p2 = pnand %p2287_p5, %p63_p13  ;;  %s393_s30 = sand.u32 1, %s2664_s18  }
  0x37   : > { %3276 = sst [smem:[#allocation29_spill]] %s2843_s12  ;;  %s397_s13 = scalar_lea.vmem [#allocation7], %s2837_s25 }
  0x38   : > { %s3278_s1 = sld [smem:[#allocation30_spill]]  ;;  %s404_s22 = sshll.u32 %s397_s13, 4  ;;  %s405_s22 = int_to_ptr.vmem [resolvable:$true] %s404_s22 }
  0x39   : > { %s2669_s9 = smov [#allocation12]   ;;  %s2855_s8 = scalar_lea.sflag [#allocation8], %s393_s30 }
  0x3a   : > { %s342_s17 = sshll.u32 %s2669_s9, 4  ;;  %p3255_p9 = pneg %p2845_p2  ;;  %s343_s17 = int_to_ptr.vmem [resolvable:$true] %s342_s17 }
  0x3b   : > { %s2419_s20 = scalar_lea.vmem %s405_s22, 128  ;;  %s2670_s12 = smov [#allocation7]  }
  0x3c   : > { %p2420_p10 = scmp.ne.s32.totalorder %s405_s22, %s2419_s20  ;;  %s2424_s18 = sshll.u32 %s2670_s12, 4  ;;  %s2425_s18 = int_to_ptr.vmem [resolvable:$false] %s2424_s18 }
  0x3d   : > { %s2426_s3 = scalar_lea.vmem %s2425_s18, 256  ;;  %p2427_p5 = scmp.lt.s32.totalorder %s405_s22, %s2425_s18 }
  0x3e   : > { %s402_s28 = scalar_lea.hbm %s3278_s1, %s2840_s11  ;;  %p2422_p13 = pnand %p2420_p10, %p3255_p9 }
  0x3f   : > { %p2428_p7 = scmp.lt.s32.totalorder %s2426_s3, %s2419_s20 }
  0x40   : > { %p2423_p0 = pneg %p2422_p13 }
  0x41   : > { %p2429_p1 = por %p2428_p7, %p2427_p5 }
  0x43   : > { %p2430_p12 = pnand %p2429_p1, %p2423_p0 }
  0x45   : > { %2433 = shalt.err (!%p2430_p12)
}
  0x46   : > { %2273 = dma.hbm_to_vmem [thread:$0]  (!%p2845_p2), %s402_s28, 128, %s405_s22, %s2855_s8  }
  0x47   : > { %s2445_s9 = scalar_lea.vmem %s343_s17, 256  ;;  %p3279_p10 = pneg %p2801_p11 }
  0x48   : > { %p2446_p6 = scmp.ne.s32.totalorder %s343_s17, %s2445_s9  ;;  %p2453_p3 = scmp.lt.s32.totalorder %s343_s17, %s343_s17 }
  0x49   : > { %p2454_p4 = scmp.lt.s32.totalorder %s2445_s9, %s2445_s9 }
  0x4a   : > { %p2448_p13 = pnand %p2446_p6, %p3279_p10 }
  0x4b   : > { %p2455_p8 = por %p2454_p4, %p2453_p3 }
  0x4c   : > { %p2449_p9 = pneg %p2448_p13 }
  0x4e   : > { %p2456_p5 = pnand %p2455_p8, %p2449_p9 }
  0x50   : > { %2459 = shalt.err (!%p2456_p5)
}
  0x51   : > { %s3280_s13 = smov 4   ;;  %s3281_s18 = smov 64  }
  0x52   : > { %s3282_s5 = sld [smem:[#allocation32_spill]]  ;;  %s2671_s22 = smov [#allocation13]  }
  0x53   : > { %s358_s12 = sshll.u32 %s2671_s22, 4  ;;  %p3283_p6 = pmov %p3279_p10  ;;  %s359_s12 = int_to_ptr.vmem [resolvable:$true] %s358_s12 }
  0x54   : > { %s2471_s28 = scalar_lea.vmem %s359_s12, 256  ;;  %p2479_p12 = scmp.lt.s32.totalorder %s359_s12, %s359_s12 }
  0x55   : > { %p2472_p1 = scmp.ne.s32.totalorder %s359_s12, %s2471_s28  ;;  %p2480_p3 = scmp.lt.s32.totalorder %s2471_s28, %s2471_s28 }
  0x57   : > { %p2474_p4 = pnand %p2472_p1, %p3283_p6  ;;  %p2481_p9 = por %p2480_p3, %p2479_p12 }
  0x58   : > { %2263 = dma.hbm_to_vmem [thread:$0]  (!%p2801_p11), %s3282_s5, 256, %s343_s17, [#allocation11], %s3281_s18, %s3281_s18, %s3280_s13  }
  0x59   : > { %p2475_p8 = pneg %p2474_p4 }
  0x5b   : > { %p2482_p0 = pnand %p2481_p9, %p2475_p8 }
  0x5d   : > { %2485 = shalt.err (!%p2482_p0)
}
  0x5e   : > { %2266 = dma.hbm_to_vmem [thread:$0]  (!%p2801_p11), %s3237_s7, 256, %s359_s12, [#allocation14], %s3281_s18, %s3281_s18, %s3280_s13  }
  0x5f   : > { %s384_s27 = scalar_lea.hbm %s3230_s0, %s2840_s11  ;;  %s379_s30 = scalar_lea.vmem [#allocation4], %s2837_s25 }
  0x60   : > { %s386_s22 = sshll.u32 %s379_s30, 4  ;;  %s3284_s28 = sand.u32 1, %s2652_s15   ;;  %s387_s22 = int_to_ptr.vmem [resolvable:$true] %s386_s22 }
  0x61   : > { %s376_s26 = scalar_lea.sflag [#allocation5], %s3284_s28  ;;  %s2499_s1 = scalar_lea.vmem %s387_s22, 128 }
  0x62   : > { %p2500_p7 = scmp.ne.s32.totalorder %s387_s22, %s2499_s1  ;;  %p3285_p10 = pneg %p2845_p2 }
  0x63   : > { %s2672_s17 = smov [#allocation4]  }
  0x64   : > { %p2502_p13 = pnand %p2500_p7, %p3285_p10  ;;  %s2504_s20 = sshll.u32 %s2672_s17, 4  ;;  %s2505_s20 = int_to_ptr.vmem [resolvable:$false] %s2504_s20 }
  0x65   : > { %s2506_s5 = scalar_lea.vmem %s2505_s20, 256  ;;  %p2507_p11 = scmp.lt.s32.totalorder %s387_s22, %s2505_s20 }
  0x66   : > { %p2503_p5 = pneg %p2502_p13  ;;  %p2508_p1 = scmp.lt.s32.totalorder %s2506_s5, %s2499_s1 }
  0x68   : > { %p2509_p6 = por %p2508_p1, %p2507_p11 }
  0x6a   : > { %p2510_p4 = pnand %p2509_p6, %p2503_p5 }
  0x6c   : > { %2513 = shalt.err (!%p2510_p4)
}
  0x6d   : > { %2270 = dma.hbm_to_vmem [thread:$0]  (!%p2845_p2), %s384_s27, 128, %s387_s22, %s376_s26  }
  0x6e   : > { %s421_s12 = scalar_lea.hbm %s3232_s2, %s2840_s11  ;;  %s415_s3 = scalar_lea.vmem [#allocation9], %s2837_s25 }
  0x6f   : > { %s423_s9 = sshll.u32 %s415_s3, 4  ;;  %p3286_p12 = pmov %p3285_p10  ;;  %s424_s9 = int_to_ptr.vmem [resolvable:$true] %s423_s9 }
  0x70   : > { %s2527_s30 = scalar_lea.vmem %s424_s9, 128  ;;  %s2673_s1 = smov [#allocation9]  }
  0x71   : > { %p2528_p8 = scmp.ne.s32.totalorder %s424_s9, %s2527_s30  ;;  %s2532_s5 = sshll.u32 %s2673_s1, 4  ;;  %s2533_s5 = int_to_ptr.vmem [resolvable:$false] %s2532_s5 }
  0x72   : > { %s2534_s28 = scalar_lea.vmem %s2533_s5, 256  ;;  %p2535_p0 = scmp.lt.s32.totalorder %s424_s9, %s2533_s5 }
  0x73   : > { %p2530_p3 = pnand %p2528_p8, %p3286_p12  ;;  %p2536_p7 = scmp.lt.s32.totalorder %s2534_s28, %s2527_s30 }
  0x75   : > { %p2531_p9 = pneg %p2530_p3  ;;  %p2537_p10 = por %p2536_p7, %p2535_p0 }
  0x77   : > { %p2538_p13 = pnand %p2537_p10, %p2531_p9 }
  0x79   : > { %2541 = shalt.err (!%p2538_p13)
}
  0x7a   : > { %2276 = dma.hbm_to_vmem [thread:$0]  (!%p2845_p2), %s421_s12, 128, %s424_s9, %s2855_s8  }
  0x7b   : > { %p3287_p5 = scmp.ne.s32.totalorder %s3270_s23, 0 }
  0x7c   : > { %s2913_s25 = sand.u32 (!%p3287_p5), 1, %s2648_s14   ;;  %p3288_p11 = scmp.ne.s32.totalorder (!%p3287_p5), %s3267_s21, 0 }
  0x7d   : > { %432 = sbr.rel (%p3287_p5) target bundleno = 1563 (0x61b), region = 56  ;;  %s2916_s11 = sshll.u32 (!%p3287_p5), %s2913_s25, 3 }
  0x7e   : > { %s435_s27 = scalar_lea.sflag (!%p3287_p5), [#allocation5], %s2913_s25  ;;  %s438_s22 = scalar_lea.vmem (!%p3287_p5), [#allocation4], %s2916_s11 }
  0x82   : > { %2619 = dma.done.wait (%p3288_p11), %s435_s27, 128  }
  0x83   : > { %2621 = vsyncadd (%p3288_p11), %s435_s27, 4294967168  ;;  %s443_s8 = sand.u32 1, %s2773_s19   ;;  %s447_s29 = scalar_lea.vmem [#allocation7], %s2916_s11 }
  0x84   : > { %s444_s23 = scalar_lea.sflag [#allocation8], %s443_s8 }
  0x85   : > { %2623 = dma.done.wait (%p3288_p11), %s444_s23, 256  }
  0x86   : > { %2625 = vsyncadd (%p3288_p11), %s444_s23, 4294967040  ;;  %s456_s26 = scalar_lea.vmem [#allocation9], %s2916_s11  ;;  %p3289_p2 = scmp.eq.s32.totalorder %s2773_s19, 0 }
  0x88   : > { %2627 = dma.done.wait (%p3289_p2), [#allocation11], 512   ;;  %p3290_p1 = pmov %p3289_p2 }
  0x8a   : > { %2629 = vsyncadd (%p3290_p1), [#allocation11], 4294966784  ;;  %p3291_p6 = pmov %p3290_p1 }
  0x8b   : > { %p3292_p4 = pmov %p3290_p1 }
  0x8c   : > { %2631 = dma.done.wait (%p3291_p6), [#allocation14], 256  }
  0x8d   : > { %2633 = vsyncadd (%p3292_p4), [#allocation14], 4294967040  ;;  %v2674_v0 = vmov 0.0   ;;  %vm2675_vm0 = vmmov 0   ;;  %v2356_v1 = vld [vmem:[#allocation10 + $0x8] sm:$0xff]   ;;  %v2357_v2 = vld [vmem:[#allocation10] sm:$0xff]   ;;  %v677_v28 = vlaneseq }
  0x8e   : > { %2155 = vmatprep.subr.bf16.mxu0 %v2674_v0  ;;  %2159 = vmatprep.mubr.msk.bf16.mxu0 %vm2675_vm0, %v2674_v0  ;;  %v525_v3 = vld [vmem:[%s438_s22] sm:$0xff]  ;;  %vm550_vm1 = vcmask 261120   ;;  %s2676_s17 = smov 104   ;;  %s2677_s20 = smov 120   ;;  %v594_v24 = vld [vmem:[%s447_s29] sm:$0xff]  ;;  %vm812_vm2 = vcmask 60416  }
  0x8f   : > { %2163 = vmatprep.subr.bf16.mxu1 %v2674_v0  ;;  %2167 = vmatprep.mubr.msk.bf16.mxu1 %vm2675_vm0, %v2674_v0  ;;  %v2358_v4 = vld [vmem:[#allocation12 + $0x8] sm:$0xff]   ;;  %v526_v5 = vpack.c.bf16 %v525_v3, %v525_v3  ;;  %v2359_v6 = vld [vmem:[#allocation12] sm:$0xff]   ;;  %s2678_s12 = smov 112   ;;  %v595_v25 = vpack.c.bf16 %v594_v24, %v594_v24  ;;  %v2679_v26 = vmov 1983009808   ;;  %v678_v32 = vshrl.u32 %v677_v28, 7 }
  0x90   : > { %2156 = vmatpush3.bf16.msra.mxu0 %v2356_v1  ;;  %v971_v7 = vld [vmem:[%s456_s26] sm:$0xff]  ;;  %v675_v27 = vunpack.c.l.s4 %v2679_v26  ;;  %v2680_v29 = vmov 1934713408   ;;  %vm1195_vm3 = vcmask 64512   ;;  %vm1439_vm4 = vcmask 1043456   ;;  %s2086_s3 = sshll.u32 %s2913_s25, 5 }
  0x91   : > { %2157 = vmatprep.subr.bf16.mxu0 %v2674_v0  ;;  %v972_v8 = vpack.c.bf16 %v971_v7, %v971_v7  ;;  %v2087_v9 = vld [vmem:[%s3234_s4] ss:$0 sm:$0xff]  ;;  %v2360_v17 = vld [vmem:[#allocation12 + $0x8] sm:$0xff]   ;;  %v707_v30 = vunpack.c.l.s4 %v2680_v29  ;;  %s3095_s9 = scalar_lea.vmem [#allocation16], %s2086_s3  ;;  %s2681_s30 = smov 16   ;;  %vm1770_vm5 = vcmask 130048  }
  0x92   : > { %v2963_v15 = vld [vmem:[%s3236_s6] ss:$0 sm:$0xff]  ;;  %2164 = vmatpush3.bf16.msra.mxu1 %v2360_v17  ;;  %v676_v31 = vunpack.c.0.s8 %v675_v27  ;;  %s2682_s1 = smov 8   ;;  %s2683_s5 = smov 24   ;;  %vm1772_vm6 = vcmask 195584  }
  0x93   : > { %2165 = vmatprep.subr.bf16.mxu1 %v2674_v0  ;;  %v2361_v22 = vld [vmem:[#allocation12] sm:$0xff]   ;;  %v708_v35 = vunpack.c.0.s8 %v707_v30  ;;  %s2126_s28 = sshll.u32 %s2656_s16, 9  ;;  %s1876_s27 = sshll.u32 %s3095_s9, 4  ;;  %s3147_s27 = int_to_ptr.vmem [resolvable:$true] %s1876_s27 }
  0x94   : > { %2158 = vmatpush3.bf16.msra.mxu0 %v2357_v2  ;;  %v2982_v36 = vsub.s32 %v676_v31, %v678_v32  ;;  %s3145_s23 = scalar_lea.hbm %s3240_s10, %s2126_s28  ;;  %s1848_s29 = scalar_lea.sflag [#allocation17], %s2913_s25 }
  0x95   : > { %2171 = vmatprep.subr.bf16.mxu0 %v2674_v0  ;;  %v2984_v42 = vsub.s32 %v708_v35, %v678_v32  ;;  %s2542_s26 = scalar_lea.vmem %s3147_s27, 512  ;;  %p3293_p12 = scmp.ne.s32.totalorder %s3275_s24, 0 }
  0x96   : > { %2166 = vmatpush3.bf16.msra.mxu1 %v2361_v22  ;;  %p2543_p8 = scmp.ne.s32.totalorder %s3147_s27, %s2542_s26  ;;  %s2684_s19 = smov [#allocation16]  }
  0x97   : > { %2160 = vmatmul.mubr.msk.bf16.vlgmr.msra.gmra.mxu0 %vm550_vm1, %v526_v5  ;;  %2179 = vmatprep.subr.bf16.mxu1 %v2674_v0  ;;  %s2546_s21 = sshll.u32 %s2684_s19, 4  ;;  %s2547_s21 = int_to_ptr.vmem [resolvable:$false] %s2546_s21 }
  0x98   : > { %2172 = vmatpush3.bf16.msra.mxu0 %v2358_v4  ;;  %2175 = vmatprep.mubr.msk.bf16.mxu0 %vm2675_vm0, %v2674_v0  ;;  %p2544_p3 = pnand %p2543_p8, %p3293_p12  ;;  %p2549_p0 = scmp.lt.s32.totalorder %s3147_s27, %s2547_s21 }
  0x99   : > { %2173 = vmatprep.subr.bf16.mxu0 %v2674_v0  ;;  %2168 = vmatmul.mubr.msk.bf16.vlgmr.msra.gmra.mxu1 %vm550_vm1, %v595_v25 }
  0x9a   : > { %2181 = vmatprep.mubr.msk.bf16.mxu1 %vm2675_vm0, %v2674_v0  ;;  %p2545_p9 = pneg %p2544_p3 }
  0x9c   : > { %2174 = vmatpush3.bf16.msra.mxu0 %v2359_v6 }
  0x9d   : > { %2185 = vmatprep.subr.bf16.mxu0 %v2674_v0 }
  0x9f   : > { %2176 = vmatmul.mubr.msk.bf16.vlgmr.msra.gmra.mxu0 %vm550_vm1, %v972_v8 }
  0xa0   : > { %2187 = vmatprep.mubr.msk.bf16.mxu0 %vm2675_vm0, %v2674_v0 }
 0x157   : > { %v588_v10 = vpop.f32.mrf.mxu0 }
 0x158   : > { %v589_v11 = vadd.f32 %v2087_v9, %v588_v10 }
 0x159   : > { %v2161_v12 = vpop.f32.mrf.mxu0 }
 0x15a   : > { %669 = vrot.lane.b32.xlu1 %v589_v11, %s2676_s17  ;;  %663 = vrot.lane.b32.xlu0 %v589_v11, %s2677_s20 }
 0x15b   : > { %v591_v13 = vpop.f32.mrf.mxu0 }
 0x15d   : > { %v2162_v14 = vpop.f32.mrf.mxu0 }
 0x15e   : > { %666 = vrot.lane.b32.xlu0 %v589_v11, %s2678_s12 }
 0x15f   : > { %v1034_v16 = vpop.f32.mrf.mxu0 }
 0x160   : > { %v1035_v18 = vadd.f32 %v2963_v15, %v1034_v16 }
 0x161   : > { %v2177_v19 = vpop.f32.mrf.mxu0 }
 0x162   : > { %v2967_v20 = vmul.f32 0.35355338, %v1035_v18 }
 0x163   : > { %v1037_v21 = vpop.f32.mrf.mxu0 }
 0x164   : > { %1045 = vrot.lane.b32.xlu0 %v2967_v20, %s2678_s12  ;;  %1042 = vrot.lane.b32.xlu1 %v2967_v20, %s2677_s20 }
 0x165   : > { %v2178_v23 = vpop.f32.mrf.mxu0 }
 0x168   : > { %1048 = vrot.lane.b32.xlu1 %v2967_v20, %s2676_s17 }
 0x1cc   : > { %v670_v33 = vpop.permute.xlu1 %669  ;;  %v664_v34 = vpop.permute.xlu0 %663 }
 0x1cd   : > { %v688_v37 = vcombine.low %v664_v34, %v670_v33  ;;  %v689_v38 = vcombine.high %v664_v34, %v670_v33 }
 0x1cf   : > { %v696_v43 = vrot.slane %v688_v37, %v2982_v36  ;;  %v703_v44 = vrot.slane %v689_v38, %v2982_v36 }
 0x1d0   : > { %v667_v39 = vpop.permute.xlu0 %666 }
 0x1d1   : > { %v672_v40 = vcombine.low %v589_v11, %v667_v39  ;;  %v673_v41 = vcombine.high %v589_v11, %v667_v39 }
 0x1d3   : > { %v680_v45 = vrot.slane %v672_v40, %v2982_v36  ;;  %v687_v46 = vrot.slane %v673_v41, %v2982_v36 }
 0x1d5   : > { %v704_v47 = vcombine.low %v680_v45, %v696_v43  ;;  %v705_v48 = vcombine.high %v680_v45, %v696_v43  ;;  %v720_v49 = vcombine.low %v687_v46, %v703_v44  ;;  %v721_v50 = vcombine.high %v687_v46, %v703_v44 }
 0x1d6   : > { %v1043_v51 = vpop.permute.xlu1 %1042  ;;  %v1046_v56 = vpop.permute.xlu0 %1045 }
 0x1d7   : > { %v712_v52 = vrot.slane %v704_v47, %v2984_v42  ;;  %v719_v53 = vrot.slane %v705_v48, %v2984_v42  ;;  %v728_v54 = vrot.slane %v720_v49, %v2984_v42  ;;  %v735_v55 = vrot.slane %v721_v50, %v2984_v42 }
 0x1d8   : > { %v1051_v61 = vcombine.low %v2967_v20, %v1046_v56  ;;  %v1052_v62 = vcombine.high %v2967_v20, %v1046_v56 }
 0x1d9   : > { %v740_v57 = vcombine.low %v712_v52, %v719_v53  ;;  %v2095_v58 = vcombine.high %v712_v52, %v719_v53  ;;  %v756_v59 = vcombine.low %v728_v54, %v735_v55  ;;  %v2096_v60 = vcombine.high %v728_v54, %v735_v55 }
 0x1da   : > { %v1049_v63 = vpop.permute.xlu1 %1048  ;;  %v1059_v11 = vrot.slane %v1051_v61, %v2982_v36  ;;  %v1066_v12 = vrot.slane %v1052_v62, %v2982_v36 }
 0x1db   : > { %v747_v1 = vrot.slane %v740_v57, %v2982_v36  ;;  %v755_v2 = vrot.slane %v2095_v58, %v2982_v36  ;;  %v763_v3 = vrot.slane %v756_v59, %v2982_v36  ;;  %v771_v4 = vrot.slane %v2096_v60, %v2982_v36 }
 0x1dc   : > { %v1067_v5 = vcombine.low %v1043_v51, %v1049_v63  ;;  %v1068_v6 = vcombine.high %v1043_v51, %v1049_v63 }
 0x1dd   : > { %v772_v7 = vcombine.low %v747_v1, %v755_v2  ;;  %v773_v8 = vcombine.high %v747_v1, %v755_v2  ;;  %v788_v9 = vcombine.low %v763_v3, %v771_v4  ;;  %v789_v10 = vcombine.high %v763_v3, %v771_v4 }
 0x1de   : > { %v1075_v13 = vrot.slane %v1067_v5, %v2982_v36  ;;  %v1082_v14 = vrot.slane %v1068_v6, %v2982_v36 }
 0x1df   : > { %v780_v16 = vrot.slane %v772_v7, %v2984_v42  ;;  %v787_v17 = vrot.slane %v773_v8, %v2984_v42  ;;  %v796_v18 = vrot.slane %v788_v9, %v2984_v42  ;;  %v803_v19 = vrot.slane %v789_v10, %v2984_v42  ;;  %v656_v7 = vpop.f32.mrf.mxu1 }
 0x1e0   : > { %v1083_v20 = vcombine.low %v1059_v11, %v1075_v13  ;;  %v1084_v21 = vcombine.high %v1059_v11, %v1075_v13  ;;  %v1099_v22 = vcombine.low %v1066_v12, %v1082_v14  ;;  %v1100_v23 = vcombine.high %v1066_v12, %v1082_v14 }
 0x1e1   : > { %v804_v24 = vcombine.low %v780_v16, %v796_v18  ;;  %v805_v25 = vcombine.high %v780_v16, %v796_v18  ;;  %v806_v26 = vcombine.low %v787_v17, %v803_v19  ;;  %v807_v27 = vcombine.high %v787_v17, %v803_v19  ;;  %v2169_v8 = vpop.f32.mrf.mxu1 }
 0x1e2   : > { %v1091_v28 = vrot.slane %v1083_v20, %v2984_v42  ;;  %v1098_v29 = vrot.slane %v1084_v21, %v2984_v42  ;;  %v1107_v30 = vrot.slane %v1099_v22, %v2984_v42  ;;  %v1114_v31 = vrot.slane %v1100_v23, %v2984_v42 }
 0x1e3   : > { %v808_v32 = vpack.c.bf16 %v804_v24, %v804_v24  ;;  %v809_v33 = vpack.c.bf16 %v805_v25, %v805_v25  ;;  %v810_v34 = vpack.c.bf16 %v806_v26, %v806_v26  ;;  %v811_v35 = vpack.c.bf16 %v807_v27, %v807_v27  ;;  %v659_v9 = vpop.f32.mrf.mxu1 }
 0x1e4   : > { %v1119_v37 = vcombine.low %v1091_v28, %v1098_v29  ;;  %v2103_v38 = vcombine.high %v1091_v28, %v1098_v29  ;;  %v1135_v39 = vcombine.low %v1107_v30, %v1114_v31  ;;  %v2104_v40 = vcombine.high %v1107_v30, %v1114_v31 }
 0x1e5   : > { %813 = vst.msk [vmem:[#allocation2] sm:$0xf] %vm812_vm2, %v808_v32  ;;  %814 = vst.msk [vmem:[#allocation2 + $0x4] sm:$0xf] %vm812_vm2, %v809_v33  ;;  %v2170_v10 = vpop.f32.mrf.mxu1  ;;  %v657_v32 = vadd.f32 %v2963_v15, %v656_v7 }
 0x1e6   : > { %815 = vst.msk [vmem:[#allocation2 + $0x8] sm:$0xf] %vm812_vm2, %v810_v34  ;;  %816 = vst.msk [vmem:[#allocation2 + $0xc] sm:$0xf] %vm812_vm2, %v811_v35  ;;  %v1126_v41 = vrot.slane %v1119_v37, %v2982_v36  ;;  %v1134_v43 = vrot.slane %v2103_v38, %v2982_v36  ;;  %v1142_v44 = vrot.slane %v1135_v39, %v2982_v36 }
 0x1e7   : > { %v1150_v45 = vrot.slane %v2104_v40, %v2982_v36 }
 0x1e8   : > { %v1151_v46 = vcombine.low %v1126_v41, %v1134_v43  ;;  %v1152_v54 = vcombine.high %v1126_v41, %v1134_v43 }
 0x1e9   : > { %v1167_v47 = vcombine.low %v1142_v44, %v1150_v45  ;;  %v1168_v55 = vcombine.high %v1142_v44, %v1150_v45 }
 0x1ea   : > { %v1159_v48 = vrot.slane %v1151_v46, %v2984_v42  ;;  %v1166_v62 = vrot.slane %v1152_v54, %v2984_v42 }
 0x1eb   : > { %v1175_v49 = vrot.slane %v1167_v47, %v2984_v42  ;;  %v1182_v63 = vrot.slane %v1168_v55, %v2984_v42 }
 0x1ec   : > { %v1191_v50 = vld [vmem:[#allocation2] sm:$0xf]  ;;  %v1192_v51 = vld [vmem:[#allocation2 + $0x4] sm:$0xf] }
 0x1ed   : > { %v1200_v52 = vsel %vm1195_vm3, %v1191_v50, 0  ;;  %v1246_v53 = vsel %vm1195_vm3, %v1192_v51, 0  ;;  %v1183_v56 = vcombine.low %v1159_v48, %v1175_v49  ;;  %v1184_v57 = vcombine.high %v1159_v48, %v1175_v49  ;;  %v1193_v58 = vld [vmem:[#allocation2 + $0x8] sm:$0xf]  ;;  %v1194_v59 = vld [vmem:[#allocation2 + $0xc] sm:$0xf] }
 0x1ee   : > { %2180 = vmatpush3.bf16.xpose.msra.mxu1 %v1200_v52  ;;  %2186 = vmatpush3.bf16.xpose.msra.mxu0 %v1246_v53  ;;  %v1292_v1 = vsel %vm1195_vm3, %v1193_v58, 0  ;;  %v1338_v2 = vsel %vm1195_vm3, %v1194_v59, 0  ;;  %v1185_v3 = vcombine.low %v1166_v62, %v1182_v63  ;;  %v1186_v4 = vcombine.high %v1166_v62, %v1182_v63 }
 0x1ef   : > { %2191 = vmatprep.subr.bf16.mxu1 %v2674_v0  ;;  %2197 = vmatprep.subr.bf16.mxu0 %v2674_v0  ;;  %v1187_v60 = vpack.c.bf16 %v1183_v56, %v1183_v56  ;;  %v1188_v61 = vpack.c.bf16 %v1184_v57, %v1184_v57 }
 0x1f0   : > { %v1189_v5 = vpack.c.bf16 %v1185_v3, %v1185_v3  ;;  %v1190_v6 = vpack.c.bf16 %v1186_v4, %v1186_v4 }
 0x1f5   : > { %2182 = vmatmul.mubr.msk.bf16.vlgmr.msra.gmra.mxu1 %vm1195_vm3, %v1187_v60  ;;  %2188 = vmatmul.mubr.msk.bf16.vlgmr.msra.gmra.mxu0 %vm1195_vm3, %v1188_v61 }
 0x1f6   : > { %2192 = vmatpush3.bf16.xpose.msra.mxu1 %v1292_v1  ;;  %2198 = vmatpush3.bf16.xpose.msra.mxu0 %v1338_v2 }
 0x1f7   : > { %2193 = vmatprep.mubr.msk.bf16.mxu1 %vm2675_vm0, %v2674_v0  ;;  %2199 = vmatprep.mubr.msk.bf16.mxu0 %vm2675_vm0, %v2674_v0 }
 0x1f8   : > { %2203 = vmatprep.subr.bf16.mxu1 %v2674_v0  ;;  %2209 = vmatprep.subr.bf16.mxu0 %v2674_v0 }
 0x1fd   : > { %2194 = vmatmul.mubr.msk.bf16.vlgmr.msra.gmra.mxu1 %vm1195_vm3, %v1189_v5  ;;  %2200 = vmatmul.mubr.msk.bf16.vlgmr.msra.gmra.mxu0 %vm1195_vm3, %v1190_v6 }
 0x1fe   : > { %2205 = vmatprep.mubr.msk.bf16.mxu1 %vm2675_vm0, %v2674_v0  ;;  %2211 = vmatprep.mubr.msk.bf16.mxu0 %vm2675_vm0, %v2674_v0 }
 0x2b5   : > { %v1236_v11 = vpop.f32.mrf.mxu1  ;;  %v1282_v12 = vpop.f32.mrf.mxu0 }
 0x2b6   : > { %v1380_v13 = vsel %vm1195_vm3, %v1236_v11, -inf  ;;  %v1383_v14 = vsel %vm1195_vm3, %v1282_v12, -inf }
 0x2b7   : > { %1381 = vmax.xlane.f32.xlu0 %v1380_v13  ;;  %v2183_v16 = vpop.f32.mrf.mxu1  ;;  %1384 = vmax.xlane.f32.xlu1 %v1383_v14  ;;  %v2189_v17 = vpop.f32.mrf.mxu0 }
 0x2b9   : > { %v1239_v18 = vpop.f32.mrf.mxu1  ;;  %v1285_v19 = vpop.f32.mrf.mxu0 }
 0x2bb   : > { %v2184_v20 = vpop.f32.mrf.mxu1  ;;  %v2190_v21 = vpop.f32.mrf.mxu0 }
 0x2bd   : > { %v1328_v22 = vpop.f32.mrf.mxu1  ;;  %v1374_v23 = vpop.f32.mrf.mxu0 }
 0x2be   : > { %v1386_v24 = vsel %vm1195_vm3, %v1328_v22, -inf  ;;  %v1389_v29 = vsel %vm1195_vm3, %v1374_v23, -inf }
 0x2bf   : > { %1387 = vmax.xlane.f32.xlu0 %v1386_v24  ;;  %v2195_v25 = vpop.f32.mrf.mxu1  ;;  %v2201_v26 = vpop.f32.mrf.mxu0 }
 0x2c1   : > { %v1331_v27 = vpop.f32.mrf.mxu1  ;;  %v1377_v28 = vpop.f32.mrf.mxu0 }
 0x2c3   : > { %v2196_v30 = vpop.f32.mrf.mxu1  ;;  %1390 = vmax.xlane.f32.xlu0 %v1389_v29  ;;  %v2202_v31 = vpop.f32.mrf.mxu0 }
 0x2c8   : > { %818 = vrot.lane.b32.xlu1 %v657_v32, %s2677_s20 }
 0x2cc   : > { %824 = vrot.lane.b32.xlu1 %v657_v32, %s2676_s17  ;;  %s2548_s17 = scalar_lea.vmem %s2547_s21, 1024 }
 0x2cd   : > { %p2550_p7 = scmp.lt.s32.totalorder %s2548_s17, %s2542_s26 }
 0x2cf   : > { %p2551_p10 = por %p2550_p7, %p2549_p0 }
 0x2d1   : > { %p2552_p13 = pnand %p2551_p10, %p2545_p9 }
 0x2d9   : > { %821 = vrot.lane.b32.xlu0 %v657_v32, %s2678_s12 }
 0x340   : > { %v1382_v33 = vpop.xlane.xlu0 %1381  ;;  %v1385_v34 = vpop.xlane.xlu1 %1384 }
 0x341   : > { %v1392_v35 = vsub.f32 %v1236_v11, %v1382_v33  ;;  %v1393_v37 = vsub.f32 %v1282_v12, %v1385_v34 }
 0x343   : > { %v1396_v38 = vmul.f32 1.442695, %v1392_v35  ;;  %v1398_v39 = vmul.f32 1.442695, %v1393_v37 }
 0x344   : > { %v819_v40 = vpop.permute.xlu1 %818 }
 0x345   : > { %2364 = vpow2.f32 %v1396_v38 }
 0x346   : > { %2366 = vpow2.f32 %v1398_v39 }
 0x348   : > { %v1388_v41 = vpop.xlane.xlu0 %1387  ;;  %v825_v45 = vpop.permute.xlu1 %824 }
 0x349   : > { %v1394_v43 = vsub.f32 %v1328_v22, %v1388_v41  ;;  %v843_v47 = vcombine.low %v819_v40, %v825_v45  ;;  %v844_v48 = vcombine.high %v819_v40, %v825_v45 }
 0x34b   : > { %v1400_v44 = vmul.f32 1.442695, %v1394_v43  ;;  %v851_v54 = vrot.slane %v843_v47, %v2982_v36  ;;  %v858_v56 = vrot.slane %v844_v48, %v2982_v36 }
 0x34c   : > { %v1391_v15 = vpop.xlane.xlu0 %1390 }
 0x34d   : > { %2368 = vpow2.f32 %v1400_v44  ;;  %v1395_v46 = vsub.f32 %v1374_v23, %v1391_v15 }
 0x34f   : > { %v1402_v49 = vmul.f32 1.442695, %v1395_v46 }
 0x350   : > { %v822_v50 = vpop.permute.xlu0 %821 }
 0x351   : > { %2370 = vpow2.f32 %v1402_v49  ;;  %v827_v51 = vcombine.low %v657_v32, %v822_v50  ;;  %v828_v52 = vcombine.high %v657_v32, %v822_v50 }
 0x352   : > { %v3052_v53 = vpop.eup %2364 }
 0x353   : > { %v3055_v55 = vpop.eup %2366  ;;  %v835_v57 = vrot.slane %v827_v51, %v2982_v36  ;;  %v842_v58 = vrot.slane %v828_v52, %v2982_v36  ;;  %v1404_v59 = vsel %vm1195_vm3, %v3052_v53, 0.0 }
 0x354   : > { %1405 = vadd.xlane.f32.xlu1 %v1404_v59  ;;  %v1407_v60 = vsel %vm1195_vm3, %v3055_v55, 0.0 }
 0x355   : > { %v859_v61 = vcombine.low %v835_v57, %v851_v54  ;;  %v860_v62 = vcombine.high %v835_v57, %v851_v54  ;;  %v875_v63 = vcombine.low %v842_v58, %v858_v56  ;;  %v876_v1 = vcombine.high %v842_v58, %v858_v56  ;;  %1408 = vadd.xlane.f32.xlu0 %v1407_v60 }
 0x357   : > { %v867_v2 = vrot.slane %v859_v61, %v2984_v42  ;;  %v874_v3 = vrot.slane %v860_v62, %v2984_v42  ;;  %v883_v4 = vrot.slane %v875_v63, %v2984_v42  ;;  %v890_v5 = vrot.slane %v876_v1, %v2984_v42 }
 0x359   : > { %v895_v6 = vcombine.low %v867_v2, %v874_v3  ;;  %v2097_v7 = vcombine.high %v867_v2, %v874_v3  ;;  %v911_v8 = vcombine.low %v883_v4, %v890_v5  ;;  %v2098_v9 = vcombine.high %v883_v4, %v890_v5 }
 0x35a   : > { %v3068_v10 = vpop.eup %2368 }
 0x35b   : > { %v902_v11 = vrot.slane %v895_v6, %v2982_v36  ;;  %v910_v12 = vrot.slane %v2097_v7, %v2982_v36  ;;  %v918_v13 = vrot.slane %v911_v8, %v2982_v36  ;;  %v926_v14 = vrot.slane %v2098_v9, %v2982_v36 }
 0x35c   : > { %v1410_v16 = vsel %vm1195_vm3, %v3068_v10, 0.0 }
 0x35d   : > { %v927_v17 = vcombine.low %v902_v11, %v910_v12  ;;  %v928_v18 = vcombine.high %v902_v11, %v910_v12  ;;  %v943_v19 = vcombine.low %v918_v13, %v926_v14  ;;  %v944_v20 = vcombine.high %v918_v13, %v926_v14  ;;  %1411 = vadd.xlane.f32.xlu0 %v1410_v16 }
 0x35e   : > { %v3076_v21 = vpop.eup %2370 }
 0x35f   : > { %v935_v22 = vrot.slane %v927_v17, %v2984_v42  ;;  %v942_v23 = vrot.slane %v928_v18, %v2984_v42  ;;  %v951_v24 = vrot.slane %v943_v19, %v2984_v42  ;;  %v958_v25 = vrot.slane %v944_v20, %v2984_v42 }
 0x360   : > { %v1413_v26 = vsel %vm1195_vm3, %v3076_v21, 0.0 }
 0x361   : > { %v959_v27 = vcombine.low %v935_v22, %v951_v24  ;;  %v960_v28 = vcombine.high %v935_v22, %v951_v24  ;;  %v961_v29 = vcombine.low %v942_v23, %v958_v25  ;;  %v962_v30 = vcombine.high %v942_v23, %v958_v25  ;;  %1414 = vadd.xlane.f32.xlu1 %v1413_v26  ;;  %v2362_v25 = vld [vmem:[#allocation13 + $0x8] sm:$0xff]  }
 0x363   : > { %v963_v31 = vpack.c.bf16 %v959_v27, %v959_v27  ;;  %v964_v32 = vpack.c.bf16 %v960_v28, %v960_v28  ;;  %v965_v33 = vpack.c.bf16 %v961_v29, %v961_v29  ;;  %v966_v34 = vpack.c.bf16 %v962_v30, %v962_v30 }
 0x365   : > { %967 = vst.msk [vmem:[#allocation3] sm:$0xf] %vm812_vm2, %v963_v31  ;;  %968 = vst.msk [vmem:[#allocation3 + $0x4] sm:$0xf] %vm812_vm2, %v964_v32 }
 0x366   : > { %969 = vst.msk [vmem:[#allocation3 + $0x8] sm:$0xf] %vm812_vm2, %v965_v33  ;;  %970 = vst.msk [vmem:[#allocation3 + $0xc] sm:$0xf] %vm812_vm2, %v966_v34 }
 0x36c   : > { %v1432_v35 = vld [vmem:[#allocation3] sm:$0xf]  ;;  %v1433_v37 = vld [vmem:[#allocation3 + $0x4] sm:$0xf] }
 0x36d   : > { %v1441_v38 = vsel %vm1439_vm4, %v1432_v35, 0  ;;  %v1487_v39 = vsel %vm1439_vm4, %v1433_v37, 0  ;;  %v1434_v48 = vld [vmem:[#allocation3 + $0x8] sm:$0xf]  ;;  %v1435_v50 = vld [vmem:[#allocation3 + $0xc] sm:$0xf] }
 0x36e   : > { %2204 = vmatpush3.bf16.msra.mxu1 %v1441_v38  ;;  %2210 = vmatpush3.bf16.msra.mxu0 %v1487_v39  ;;  %v1533_v52 = vsel %vm1439_vm4, %v1434_v48, 0  ;;  %v2363_v35 = vld [vmem:[#allocation13] sm:$0xff]  }
 0x36f   : > { %2215 = vmatprep.subr.bf16.mxu1 %v2674_v0  ;;  %2221 = vmatprep.subr.bf16.mxu0 %v2674_v0 }
 0x3dd   : > { %v1406_v40 = vpop.xlane.xlu1 %1405 }
 0x3de   : > { %2372 = vrcp.f32 %v1406_v40  ;;  %v1409_v41 = vpop.xlane.xlu0 %1408 }
 0x3df   : > { %2374 = vrcp.f32 %v1409_v41 }
 0x3e6   : > { %v1412_v43 = vpop.xlane.xlu0 %1411 }
 0x3e7   : > { %2376 = vrcp.f32 %v1412_v43 }
 0x3ea   : > { %v1415_v44 = vpop.xlane.xlu1 %1414 }
 0x3eb   : > { %v2373_v45 = vpop.eup %2372  ;;  %2378 = vrcp.f32 %v1415_v44 }
 0x3ec   : > { %v2375_v15 = vpop.eup %2374  ;;  %v1417_v46 = vmul.f32 %v2373_v45, %v3052_v53  ;;  %v1579_v53 = vsel %vm1439_vm4, %v1435_v50, 0 }
 0x3ed   : > { %v1419_v47 = vmul.f32 %v2375_v15, %v3055_v55 }
 0x3ee   : > { %1424 = vst.msk [vmem:[%s3095_s9] sm:$0xff] %vm1195_vm3, %v1417_v46  ;;  %v1428_v49 = vpack.c.bf16 %v1417_v46, %v1417_v46 }
 0x3ef   : > { %1425 = vst.msk [vmem:[%s3095_s9 + $0x8] sm:$0xff] %vm1195_vm3, %v1419_v47  ;;  %v1429_v51 = vpack.c.bf16 %v1419_v47, %v1419_v47 }
 0x3f0   : > { %2206 = vmatmul.mubr.msk.bf16.vlgmr.msra.gmra.mxu1 %vm1195_vm3, %v1428_v49 }
 0x3f1   : > { %2212 = vmatmul.mubr.msk.bf16.vlgmr.msra.gmra.mxu0 %vm1195_vm3, %v1429_v51  ;;  %2216 = vmatpush3.bf16.msra.mxu1 %v1533_v52 }
 0x3f2   : > { %2222 = vmatpush3.bf16.msra.mxu0 %v1579_v53  ;;  %2217 = vmatprep.mubr.msk.bf16.mxu1 %vm2675_vm0, %v2674_v0 }
 0x3f3   : > { %2223 = vmatprep.mubr.msk.bf16.mxu0 %vm2675_vm0, %v2674_v0  ;;  %2227 = vmatprep.subr.bf16.mxu1 %v2674_v0 }
 0x3f4   : > { %v2377_v54 = vpop.eup %2376 }
 0x3f5   : > { %v1421_v55 = vmul.f32 %v2377_v54, %v3068_v10 }
 0x3f7   : > { %1426 = vst.msk [vmem:[%s3095_s9 + $0x10] sm:$0xff] %vm1195_vm3, %v1421_v55  ;;  %v1430_v56 = vpack.c.bf16 %v1421_v55, %v1421_v55 }
 0x3f8   : > { %v2379_v57 = vpop.eup %2378 }
 0x3f9   : > { %2218 = vmatmul.mubr.msk.bf16.vlgmr.msra.gmra.mxu1 %vm1195_vm3, %v1430_v56  ;;  %v1423_v58 = vmul.f32 %v2379_v57, %v3076_v21 }
 0x3fa   : > { %2231 = vmatprep.mubr.msk.bf16.mxu1 %vm2675_vm0, %v2674_v0  ;;  %2228 = vmatpush3.bf16.msra.mxu1 %v2362_v25 }
 0x3fb   : > { %1427 = vst.msk [vmem:[%s3095_s9 + $0x18] sm:$0xff] %vm1195_vm3, %v1423_v58  ;;  %v1431_v59 = vpack.c.bf16 %v1423_v58, %v1423_v58  ;;  %2229 = vmatprep.subr.bf16.mxu1 %v2674_v0 }
 0x3fd   : > { %2224 = vmatmul.mubr.msk.bf16.vlgmr.msra.gmra.mxu0 %vm1195_vm3, %v1431_v59 }
 0x3fe   : > { %2230 = vmatpush3.bf16.msra.mxu1 %v2363_v35 }
 0x4b0   : > { %v1477_v60 = vpop.f32.mrf.mxu1 }
 0x4b1   : > { %v1523_v61 = vpop.f32.mrf.mxu0 }
 0x4b2   : > { %v2207_v62 = vpop.f32.mrf.mxu1 }
 0x4b3   : > { %v2213_v63 = vpop.f32.mrf.mxu0 }
 0x4b4   : > { %v1480_v1 = vpop.f32.mrf.mxu1 }
 0x4b5   : > { %v1526_v2 = vpop.f32.mrf.mxu0 }
 0x4b6   : > { %v2208_v3 = vpop.f32.mrf.mxu1 }
 0x4b7   : > { %v2214_v4 = vpop.f32.mrf.mxu0 }
 0x4b9   : > { %v1569_v5 = vpop.f32.mrf.mxu1 }
 0x4ba   : > { %v1621_v7 = vcombine.low %v1477_v60, %v1569_v5  ;;  %v1622_v8 = vcombine.high %v1477_v60, %v1569_v5 }
 0x4bb   : > { %v2219_v6 = vpop.f32.mrf.mxu1 }
 0x4bc   : > { %v1629_v16 = vrot.slane %v1621_v7, %v2982_v36  ;;  %v1636_v17 = vrot.slane %v1622_v8, %v2982_v36 }
 0x4bd   : > { %v1572_v9 = vpop.f32.mrf.mxu1  ;;  %v1615_v10 = vpop.f32.mrf.mxu0 }
 0x4be   : > { %v1637_v11 = vcombine.low %v1523_v61, %v1615_v10  ;;  %v1638_v12 = vcombine.high %v1523_v61, %v1615_v10 }
 0x4bf   : > { %v2220_v13 = vpop.f32.mrf.mxu1  ;;  %v2225_v14 = vpop.f32.mrf.mxu0 }
 0x4c0   : > { %v1645_v18 = vrot.slane %v1637_v11, %v2982_v36  ;;  %v1652_v19 = vrot.slane %v1638_v12, %v2982_v36 }
 0x4c1   : > { %v1618_v20 = vpop.f32.mrf.mxu0 }
 0x4c2   : > { %v1653_v21 = vcombine.low %v1629_v16, %v1645_v18  ;;  %v1654_v22 = vcombine.high %v1629_v16, %v1645_v18  ;;  %v1669_v23 = vcombine.low %v1636_v17, %v1652_v19  ;;  %v1670_v24 = vcombine.high %v1636_v17, %v1652_v19 }
 0x4c3   : > { %v2226_v26 = vpop.f32.mrf.mxu0 }
 0x4c4   : > { %v1661_v27 = vrot.slane %v1653_v21, %v2984_v42  ;;  %v1668_v28 = vrot.slane %v1654_v22, %v2984_v42  ;;  %v1677_v29 = vrot.slane %v1669_v23, %v2984_v42  ;;  %v1684_v30 = vrot.slane %v1670_v24, %v2984_v42 }
 0x4c6   : > { %v1689_v31 = vcombine.low %v1661_v27, %v1668_v28  ;;  %v2113_v32 = vcombine.high %v1661_v27, %v1668_v28  ;;  %v1705_v33 = vcombine.low %v1677_v29, %v1684_v30  ;;  %v2114_v34 = vcombine.high %v1677_v29, %v1684_v30 }
 0x4c8   : > { %v1696_v37 = vrot.slane %v1689_v31, %v2982_v36  ;;  %v1704_v38 = vrot.slane %v2113_v32, %v2982_v36  ;;  %v1712_v39 = vrot.slane %v1705_v33, %v2982_v36  ;;  %v1720_v40 = vrot.slane %v2114_v34, %v2982_v36 }
 0x4ca   : > { %v1722_v41 = vcombine.high %v1696_v37, %v1704_v38  ;;  %v1738_v43 = vcombine.high %v1712_v39, %v1720_v40  ;;  %v1721_v44 = vcombine.low %v1696_v37, %v1704_v38  ;;  %v1737_v45 = vcombine.low %v1712_v39, %v1720_v40 }
 0x4cc   : > { %v1736_v0 = vrot.slane %v1722_v41, %v2984_v42  ;;  %v1752_v15 = vrot.slane %v1738_v43, %v2984_v42  ;;  %v1729_v46 = vrot.slane %v1721_v44, %v2984_v42  ;;  %v1745_v47 = vrot.slane %v1737_v45, %v2984_v42 }
 0x4ce   : > { %v1755_v48 = vcombine.low %v1736_v0, %v1752_v15  ;;  %v1754_v49 = vcombine.high %v1729_v46, %v1745_v47  ;;  %v1753_v50 = vcombine.low %v1729_v46, %v1745_v47  ;;  %v1756_v36 = vcombine.high %v1736_v0, %v1752_v15 }
 0x4d0   : > { %1762 = vrot.lane.b32.xlu1 %v1755_v48, %s2681_s30  ;;  %1758 = vrot.lane.b32.xlu0 %v1754_v49, %s2682_s1 }
 0x4d4   : > { %1766 = vrot.lane.b32.xlu1 %v1756_v36, %s2683_s5 }
 0x542   : > { %v1763_v51 = vpop.permute.xlu1 %1762  ;;  %v1759_v52 = vpop.permute.xlu0 %1758 }
 0x543   : > { %v1769_v53 = vsel %vm1195_vm3, %v1753_v50, %v1759_v52 }
 0x544   : > { %v1771_v54 = vsel %vm1770_vm5, %v1769_v53, %v1763_v51 }
 0x546   : > { %v1767_v42 = vpop.permute.xlu1 %1766 }
 0x547   : > { %v1773_v55 = vsel %vm1772_vm6, %v1771_v54, %v1767_v42 }
 0x548   : > { %v1774_v56 = vpack.c.bf16 %v1773_v55, %v1773_v55 }
 0x54a   : > { %2232 = vmatmul.mubr.msk.bf16.vlgmr.msra.gmra.mxu1 %vm550_vm1, %v1774_v56 }
 0x54b   : > { %2555 = shalt.err (!%p2552_p13)
}
 0x54c   : > { %s2556_s20 = scalar_lea.hbm %s3145_s23, 512  ;;  %s2560_s12 = scalar_lea.hbm %s3240_s10, 1024 }
 0x54d   : > { %p2557_p5 = scmp.ne.s32.totalorder %s3145_s23, %s2556_s20  ;;  %p2561_p1 = scmp.lt.s32.totalorder %s3145_s23, %s3240_s10 }
 0x54e   : > { %p2562_p6 = scmp.lt.s32.totalorder %s2560_s12, %s2556_s20 }
 0x54f   : > { %p2558_p11 = pnand %p2557_p5, %p3293_p12 }
 0x550   : > { %p2563_p4 = por %p2562_p6, %p2561_p1 }
 0x551   : > { %p2559_p2 = pneg %p2558_p11 }
 0x553   : > { %p2564_p8 = pnand %p2563_p4, %p2559_p2 }
 0x555   : > { %2567 = shalt.err (!%p2564_p8)
}
 0x556   : > { %s2685_s30 = smov 128   ;;  %s3294_s22 = sld [smem:[#allocation33_spill]] }
 0x557   : > { %2254 = dma.vmem_to_hbm [thread:$0]  (%p3293_p12), %s3147_s27, 512, %s3145_s23, %s1848_s29, %s2685_s30, %s2685_s30, %s2682_s1  }
 0x558   : > { %s2121_s8 = sshll.u32 %s2656_s16, 7  ;;  %s512_s26 = scalar_lea.vmem [#allocation15], %s2916_s11 }
 0x559   : > { %s1862_s19 = sshll.u32 %s512_s26, 4  ;;  %s3295_s20 = sld [smem:[#allocation34_spill]]  ;;  %s3183_s19 = int_to_ptr.vmem [resolvable:$true] %s1862_s19 }
 0x55a   : > { %s1843_s1 = scalar_lea.sflag [#allocation6], %s2913_s25  ;;  %s2568_s16 = scalar_lea.vmem %s3183_s19, 128 }
 0x55b   : > { %p2569_p3 = scmp.ne.s32.totalorder %s3183_s19, %s2568_s16  ;;  %s2686_s11 = smov [#allocation15]  }
 0x55c   : > { %v2115_v57 = vld [vmem:[%s3294_s22] ss:$0 sm:$0xff]  ;;  %s2572_s27 = sshll.u32 %s2686_s11, 4  ;;  %s2573_s27 = int_to_ptr.vmem [resolvable:$false] %s2572_s27 }
 0x55d   : > { %p2570_p9 = pnand %p2569_p3, %p3293_p12  ;;  %s2574_s23 = scalar_lea.vmem %s2573_s27, 256 }
 0x55e   : > { %p2575_p7 = scmp.lt.s32.totalorder %s3183_s19, %s2573_s27  ;;  %p2576_p10 = scmp.lt.s32.totalorder %s2574_s23, %s2568_s16 }
 0x55f   : > { %s3181_s13 = scalar_lea.hbm %s3295_s20, %s2121_s8  ;;  %p2571_p0 = pneg %p2570_p9 }
 0x560   : > { %p2577_p13 = por %p2576_p10, %p2575_p7 }
 0x562   : > { %p2578_p5 = pnand %p2577_p13, %p2571_p0 }
 0x60a   : > { %v1835_v58 = vpop.f32.mrf.mxu1 }
 0x60b   : > { %v1836_v59 = vadd.f32 %v2115_v57, %v1835_v58 }
 0x60c   : > { %v2233_v60 = vpop.f32.mrf.mxu1 }
 0x60d   : > { %1841 = vst.msk [vmem:[%s512_s26] sm:$0xff] %vm550_vm1, %v1836_v59 }
 0x60e   : > { %v1838_v61 = vpop.f32.mrf.mxu1 }
 0x60f   : > { %2581 = shalt.err (!%p2578_p5)
}
 0x610   : > { %s2582_s29 = scalar_lea.hbm %s3181_s13, 128  ;;  %s2586_s12 = scalar_lea.hbm %s3295_s20, 256 }
 0x611   : > { %p2583_p11 = scmp.ne.s32.totalorder %s3181_s13, %s2582_s29  ;;  %p2587_p6 = scmp.lt.s32.totalorder %s3181_s13, %s3295_s20 }
 0x612   : > { %p2588_p4 = scmp.lt.s32.totalorder %s2586_s12, %s2582_s29 }
 0x613   : > { %p2584_p2 = pnand %p2583_p11, %p3293_p12 }
 0x614   : > { %p2589_p8 = por %p2588_p4, %p2587_p6 }
 0x615   : > { %p2585_p1 = pneg %p2584_p2 }
 0x617   : > { %p2590_p3 = pnand %p2589_p8, %p2585_p1 }
 0x619   : > { %2593 = shalt.err (!%p2590_p3)
}
 0x61a   : > { %2253 = dma.vmem_to_hbm [thread:$0]  (%p3293_p12), %s3183_s19, 128, %s3181_s13, %s1843_s1   ;;  %v2234_v62 = vpop.f32.mrf.mxu1 }
 0x61b PF: > { %s3296_s30 = sld [smem:[#allocation24_spill]] }
 0x61c   : > { %s3297_s5 = sld [smem:[#allocation27_spill]] }
 0x61d   : > { %s3298_s28 = sld [smem:[#allocation26_spill]] }
 0x621   : > { %s1891_s22 = sand.u32 1, %s3296_s30  }
 0x622   : > { %p3299_p9 = scmp.ne.s32.totalorder %s3297_s5, 0  ;;  %s1892_s8 = scalar_lea.sflag [#allocation6], %s1891_s22 }
 0x623   : > { %p3300_p0 = scmp.ge.s32.totalorder %s3298_s28, 2 }
 0x625   : > { %p2278_p7 = pnand %p3300_p0, %p3299_p9 }
 0x627   : > { %p2279_p10 = pneg %p2278_p7 }
 0x629   : > { %2635 = dma.done.wait (%p2279_p10), %s1892_s8, 128  }
 0x62a   : > { %2637 = vsyncadd (%p2279_p10), %s1892_s8, 4294967168  ;;  %s1901_s26 = scalar_lea.sflag [#allocation17], %s1891_s22 }
 0x62b   : > { %2639 = dma.done.wait (%p2279_p10), %s1901_s26, 512  }
 0x62c   : > { %2641 = vsyncadd (%p2279_p10), %s1901_s26, 4294966784  ;;  %s35_s18 = sadd.s32 1, %s3298_s28   ;;  %s3301_s24 = sld [smem:[#allocation29_spill]] }
 0x62d   : > { %p32_p13 = scmp.ge.s32.totalorder %s35_s18, 4   ;;  %s3302_s16 = sld [smem:[#allocation25_spill]] }
 0x62e   : > { %s3303_s17 = sld [smem:[#allocation28_spill]]  ;;  %s3304_s13 = smov %s2648_s14 }
 0x62f   : > { %s3305_s14 = smov %s2652_s15  ;;  %34 = sbr.rel (!%p32_p13) target bundleno = 18 (0x12), region = 158 }
 0x632   : > { %s3306_s15 = smov %s3301_s24 }
 0x634   :  { %1906 = vsyncpa [#allocation5], 1 }
 0x635   :  { %1908 = vsyncpa [#allocation5 + $0x1], 1 }
 0x636   :  { %1909 = vsyncpa [#allocation8], 1 }
 0x637   :  { %1911 = vsyncpa [#allocation8 + $0x1], 1 }
 0x638   :  { %1912 = vsyncpa [#allocation11], 1 }
 0x639   :  { %1913 = vsyncpa [#allocation14], 1 }
 0x63a   :  { %1914 = vsyncpa [#allocation6], 1 }
 0x63b   :  { %1916 = vsyncpa [#allocation6 + $0x1], 1 }
 0x63c   :  { %1917 = vsyncpa [#allocation17], 1 }
 0x63d   :  { %1919 = vsyncpa [#allocation17 + $0x1], 1 }

</bundles_post_ra>
